<compile_context>
chip_gen: v5e
topology: v5e:2x2
jax: 0.10.0
libtpu: 0.0.40
codegen_flags: <defaults>
</compile_context>

<pallas_src>
import functools
import itertools

import numpy as np
import jax
import jax.numpy as jnp
from jax.experimental import pallas as pl
from jax.experimental.pallas import tpu as pltpu

# ----------------------------------------------------------------------------- model constants
DIMS = [96, 192, 384, 768]
PDIMS = [128, 256, 384, 768]          # channel dims padded to 128-lane multiples
HDIMS = [4 * d for d in DIMS]         # pw1 hidden dims (already 128-multiples)
DEPTHS = [3, 3, 9, 3]
KSIZE = 5
KVOL = KSIZE ** 3                     # 125 depthwise offsets
K_PAD = 128                           # padded to a multiple of KB
KB = 8                                # depthwise offsets processed per grid step
DSVOL = 8                             # 2x2x2 downsample offsets
GLOB_DIM = 1 + 1 + 1 + 1 + 9 + 15     # is_v5 = False -> 28 global features
GLOB_PAD = 128
CIN_PAD = 128
OUT_PAD = 128                         # head outputs padded to a full lane group
TN = 128                              # point-tile (rows per block)
B_PAD = 8                             # padded batch size for pooled / mask tensors


def _vmem_limit_bytes():
    try:
        cap = int(pltpu.get_tpu_info().vmem_capacity_bytes)
    except Exception:
        cap = 64 * 1024 * 1024        # conservative fallback (v7x per-core VMEM)
    return int(min(cap * 3 // 4, 100 * 1024 * 1024))


_VMEM_LIMIT = _vmem_limit_bytes()


def _cp(sem):
    return pltpu.CompilerParams(dimension_semantics=sem, vmem_limit_bytes=_VMEM_LIMIT)


def _round_up(a, m):
    return ((a + m - 1) // m) * m


# ----------------------------------------------------------------------------- in-kernel math
def _erf_approx(x):
    # Abramowitz & Stegun 7.1.26 (exp/mul/add only -> robust Mosaic lowering)
    a1, a2, a3, a4, a5 = 0.254829592, -0.284496736, 1.421413741, -1.453152027, 1.061405429
    p = 0.3275911
    s = jnp.where(x >= 0.0, 1.0, -1.0)
    ax = jnp.abs(x)
    t = 1.0 / (1.0 + p * ax)
    poly = ((((a5 * t + a4) * t + a3) * t + a2) * t + a1) * t
    return s * (1.0 - poly * jnp.exp(-ax * ax))


def _gelu(x):
    return 0.5 * x * (1.0 + _erf_approx(x * 0.7071067811865476))


# ----------------------------------------------------------------------------- Pallas kernels
def _stem_kernel(f_ref, w_ref, mT_ref, xg_ref, gw_ref, gb_ref, o_ref):
    # per-point stem conv (k=1) + fused broadcast-add of the global MLP features
    y = jnp.dot(f_ref[...], w_ref[...], preferred_element_type=jnp.float32)
    g = jnp.dot(xg_ref[...], gw_ref[...], preferred_element_type=jnp.float32) + gb_ref[...]
    y = y + jnp.dot(mT_ref[...], g, preferred_element_type=jnp.float32)
    o_ref[...] = y.astype(o_ref.dtype)


def _make_block_a_kernel(c_real):
    inv_c = 1.0 / float(c_real)

    def kern(g_ref, w_ref, dwb_ref, lng_ref, lnb_ref, pw1w_ref, pw1b_ref, h_ref, acc_ref):
        k = pl.program_id(1)

        @pl.when(k == 0)
        def _():
            acc_ref[...] = jnp.broadcast_to(dwb_ref[...], acc_ref.shape)

        acc = acc_ref[...]
        for kk in range(KB):          # small static unroll (8 offsets / grid step)
            acc = acc + g_ref[kk].astype(jnp.float32) * w_ref[pl.ds(kk, 1), :].astype(jnp.float32)
        acc_ref[...] = acc

        @pl.when(k == pl.num_programs(1) - 1)
        def _():
            x = acc_ref[...]
            # LayerNorm over the *real* channel count (padded channels are exact zeros)
            mu = jnp.sum(x, axis=-1, keepdims=True) * inv_c
            ex2 = jnp.sum(x * x, axis=-1, keepdims=True) * inv_c
            xn = (x - mu) * jax.lax.rsqrt(ex2 - mu * mu + 1e-6)
            xn = xn * lng_ref[...] + lnb_ref[...]
            y = jnp.dot(xn.astype(jnp.bfloat16), pw1w_ref[...],
                        preferred_element_type=jnp.float32) + pw1b_ref[...]
            h_ref[...] = _gelu(y).astype(h_ref.dtype)

    return kern


def _grn_stats_kernel(h_ref, m_ref, o_ref, acc_ref):
    i = pl.program_id(0)

    @pl.when(i == 0)
    def _():
        acc_ref[...] = jnp.zeros_like(acc_ref)

    h = h_ref[...].astype(jnp.float32)
    acc_ref[...] += jnp.dot(m_ref[...], h * h, preferred_element_type=jnp.float32)

    @pl.when(i == pl.num_programs(0) - 1)
    def _():
        o_ref[...] = acc_ref[...]


def _block_b_kernel(h_ref, mT_ref, nx_ref, gg_ref, gb_ref, w_ref, b_ref, res_ref, o_ref):
    h = h_ref[...].astype(jnp.float32)
    nx_pt = jnp.dot(mT_ref[...], nx_ref[...], preferred_element_type=jnp.float32)   # per-point Nx
    g = gg_ref[...] * (h * nx_pt) + gb_ref[...] + h
    y = jnp.dot(g.astype(jnp.bfloat16), w_ref[...], preferred_element_type=jnp.float32) + b_ref[...]
    o_ref[...] = (res_ref[...].astype(jnp.float32) + y).astype(o_ref.dtype)


def _make_ln_kernel(c_real):
    inv_c = 1.0 / float(c_real)

    def kern(x_ref, g_ref, b_ref, o_ref):
        x = x_ref[...].astype(jnp.float32)
        mu = jnp.sum(x, axis=-1, keepdims=True) * inv_c
        ex2 = jnp.sum(x * x, axis=-1, keepdims=True) * inv_c
        xn = (x - mu) * jax.lax.rsqrt(ex2 - mu * mu + 1e-6)
        o_ref[...] = (xn * g_ref[...] + b_ref[...]).astype(o_ref.dtype)

    return kern


def _down_kernel(g_ref, w_ref, b_ref, o_ref, acc_ref):
    k = pl.program_id(1)

    @pl.when(k == 0)
    def _():
        acc_ref[...] = jnp.broadcast_to(b_ref[...], acc_ref.shape)

    acc_ref[...] += jnp.dot(g_ref[0], w_ref[0], preferred_element_type=jnp.float32)

    @pl.when(k == pl.num_programs(1) - 1)
    def _():
        o_ref[...] = acc_ref[...].astype(o_ref.dtype)


def _pool_kernel(x_ref, mT_ref, o_ref, acc_ref):
    i = pl.program_id(0)

    @pl.when(i == 0)
    def _():
        acc_ref[...] = jnp.full_like(acc_ref, -3.0e38)

    x = x_ref[...].astype(jnp.float32)
    m = mT_ref[...]
    for b in range(B_PAD):
        col = m[:, b:b + 1]
        vals = jnp.where(col > 0.5, x, -3.0e38)
        acc_ref[pl.ds(b, 1), :] = jnp.maximum(acc_ref[pl.ds(b, 1), :],
                                              jnp.max(vals, axis=0, keepdims=True))

    @pl.when(i == pl.num_programs(0) - 1)
    def _():
        o_ref[...] = acc_ref[...]


def _heads_kernel(x_ref, w1_ref, b1_ref, w2_ref, b2_ref, w3_ref, b3_ref, fl_ref, o_ref):
    x = x_ref[...]
    y = jnp.dot(x, w1_ref[0], preferred_element_type=jnp.float32) + b1_ref[0]
    y = jnp.where(y >= 0.0, y, 0.1 * y)                                  # LeakyReLU(0.1)
    y = jnp.dot(y.astype(jnp.bfloat16), w2_ref[0], preferred_element_type=jnp.float32) + b2_ref[0]
    y = jnp.where(y >= 0.0, y, 0.1 * y)
    y = jnp.dot(y.astype(jnp.bfloat16), w3_ref[0], preferred_element_type=jnp.float32) + b3_ref[0]
    sp = jnp.where(y > 20.0, y, jnp.log(1.0 + jnp.exp(jnp.minimum(y, 20.0))))   # Softplus
    o_ref[0] = jnp.where(fl_ref[0] > 0.5, sp, y)


# ----------------------------------------------------------------------------- pallas_call wrappers
@jax.jit
def stem_call(feats, stem_w, maskT, x_glob, glob_w, glob_b):
    n_pad = feats.shape[0]
    d = stem_w.shape[1]
    n_tiles = n_pad // TN
    return pl.pallas_call(
        _stem_kernel,
        out_shape=jax.ShapeDtypeStruct((n_pad, d), jnp.bfloat16),
        grid=(n_tiles,),
        in_specs=[pl.BlockSpec((TN, feats.shape[1]), lambda i: (i, 0)),
                  pl.BlockSpec((feats.shape[1], d), lambda i: (0, 0)),
                  pl.BlockSpec((TN, B_PAD), lambda i: (i, 0)),
                  pl.BlockSpec((B_PAD, x_glob.shape[1]), lambda i: (0, 0)),
                  pl.BlockSpec((x_glob.shape[1], d), lambda i: (0, 0)),
                  pl.BlockSpec((1, d), lambda i: (0, 0))],
        out_specs=pl.BlockSpec((TN, d), lambda i: (i, 0)),
        compiler_params=_cp(("parallel",)),
    )(feats, stem_w, maskT, x_glob, glob_w, glob_b)


@functools.partial(jax.jit, static_argnames=("c_real",))
def block_a_call(gathered, dw_w, dw_b, ln_g, ln_b, pw1_w, pw1_b, *, c_real):
    k_pad, n_pad, c_pad = gathered.shape
    h = pw1_w.shape[1]
    return pl.pallas_call(
        _make_block_a_kernel(c_real),
        out_shape=jax.ShapeDtypeStruct((n_pad, h), jnp.bfloat16),
        grid=(n_pad // TN, k_pad // KB),
        in_specs=[pl.BlockSpec((KB, TN, c_pad), lambda i, k: (k, i, 0)),
                  pl.BlockSpec((KB, c_pad), lambda i, k: (k, 0)),
                  pl.BlockSpec((1, c_pad), lambda i, k: (0, 0)),
                  pl.BlockSpec((1, c_pad), lambda i, k: (0, 0)),
                  pl.BlockSpec((1, c_pad), lambda i, k: (0, 0)),
                  pl.BlockSpec((c_pad, h), lambda i, k: (0, 0)),
                  pl.BlockSpec((1, h), lambda i, k: (0, 0))],
        out_specs=pl.BlockSpec((TN, h), lambda i, k: (i, 0)),
        scratch_shapes=[pltpu.VMEM((TN, c_pad), jnp.float32)],
        compiler_params=_cp(("parallel", "arbitrary")),
    )(gathered, dw_w, dw_b, ln_g, ln_b, pw1_w, pw1_b)


@jax.jit
def grn_stats_call(h, mask):
    n_pad, hd = h.shape
    return pl.pallas_call(
        _grn_stats_kernel,
        out_shape=jax.ShapeDtypeStruct((B_PAD, hd), jnp.float32),
        grid=(n_pad // TN,),
        in_specs=[pl.BlockSpec((TN, hd), lambda i: (i, 0)),
                  pl.BlockSpec((B_PAD, TN), lambda i: (0, i))],
        out_specs=pl.BlockSpec((B_PAD, hd), lambda i: (0, 0)),
        scratch_shapes=[pltpu.VMEM((B_PAD, hd), jnp.float32)],
        compiler_params=_cp(("arbitrary",)),
    )(h, mask)


@jax.jit
def block_b_call(h, maskT, nx, grn_g, grn_b, pw2_w, pw2_b, res):
    n_pad, hd = h.shape
    c_pad = pw2_w.shape[1]
    return pl.pallas_call(
        _block_b_kernel,
        out_shape=jax.ShapeDtypeStruct((n_pad, c_pad), jnp.bfloat16),
        grid=(n_pad // TN,),
        in_specs=[pl.BlockSpec((TN, hd), lambda i: (i, 0)),
                  pl.BlockSpec((TN, B_PAD), lambda i: (i, 0)),
                  pl.BlockSpec((B_PAD, hd), lambda i: (0, 0)),
                  pl.BlockSpec((1, hd), lambda i: (0, 0)),
                  pl.BlockSpec((1, hd), lambda i: (0, 0)),
                  pl.BlockSpec((hd, c_pad), lambda i: (0, 0)),
                  pl.BlockSpec((1, c_pad), lambda i: (0, 0)),
                  pl.BlockSpec((TN, c_pad), lambda i: (i, 0))],
        out_specs=pl.BlockSpec((TN, c_pad), lambda i: (i, 0)),
        compiler_params=_cp(("parallel",)),
    )(h, maskT, nx, grn_g, grn_b, pw2_w, pw2_b, res)


@functools.partial(jax.jit, static_argnames=("c_real",))
def ln_call(x, g, b, *, c_real):
    n_pad, c_pad = x.shape
    return pl.pallas_call(
        _make_ln_kernel(c_real),
        out_shape=jax.ShapeDtypeStruct((n_pad, c_pad), jnp.bfloat16),
        grid=(n_pad // TN,),
        in_specs=[pl.BlockSpec((TN, c_pad), lambda i: (i, 0)),
                  pl.BlockSpec((1, c_pad), lambda i: (0, 0)),
                  pl.BlockSpec((1, c_pad), lambda i: (0, 0))],
        out_specs=pl.BlockSpec((TN, c_pad), lambda i: (i, 0)),
        compiler_params=_cp(("parallel",)),
    )(x, g, b)


@jax.jit
def down_call(g, w, b):
    kvol, m_pad, c_in = g.shape
    c_out = w.shape[2]
    return pl.pallas_call(
        _down_kernel,
        out_shape=jax.ShapeDtypeStruct((m_pad, c_out), jnp.bfloat16),
        grid=(m_pad // TN, kvol),
        in_specs=[pl.BlockSpec((1, TN, c_in), lambda i, k: (k, i, 0)),
                  pl.BlockSpec((1, c_in, c_out), lambda i, k: (k, 0, 0)),
                  pl.BlockSpec((1, c_out), lambda i, k: (0, 0))],
        out_specs=pl.BlockSpec((TN, c_out), lambda i, k: (i, 0)),
        scratch_shapes=[pltpu.VMEM((TN, c_out), jnp.float32)],
        compiler_params=_cp(("parallel", "arbitrary")),
    )(g, w, b)


@jax.jit
def pool_call(x, maskT):
    n_pad, c = x.shape
    return pl.pallas_call(
        _pool_kernel,
        out_shape=jax.ShapeDtypeStruct((B_PAD, c), jnp.float32),
        grid=(n_pad // TN,),
        in_specs=[pl.BlockSpec((TN, c), lambda i: (i, 0)),
                  pl.BlockSpec((TN, B_PAD), lambda i: (i, 0))],
        out_specs=pl.BlockSpec((B_PAD, c), lambda i: (0, 0)),
        scratch_shapes=[pltpu.VMEM((B_PAD, c), jnp.float32)],
        compiler_params=_cp(("arbitrary",)),
    )(x, maskT)


@jax.jit
def heads_call(x_pooled, w1, b1, w2, b2, w3, b3, flags):
    nh, d, d2 = w1.shape
    d3 = w2.shape[2]
    od = w3.shape[2]
    return pl.pallas_call(
        _heads_kernel,
        out_shape=jax.ShapeDtypeStruct((nh, B_PAD, od), jnp.float32),
        grid=(nh,),
        in_specs=[pl.BlockSpec((B_PAD, d), lambda h: (0, 0)),
                  pl.BlockSpec((1, d, d2), lambda h: (h, 0, 0)),
                  pl.BlockSpec((1, 1, d2), lambda h: (h, 0, 0)),
                  pl.BlockSpec((1, d2, d3), lambda h: (h, 0, 0)),
                  pl.BlockSpec((1, 1, d3), lambda h: (h, 0, 0)),
                  pl.BlockSpec((1, d3, od), lambda h: (h, 0, 0)),
                  pl.BlockSpec((1, 1, od), lambda h: (h, 0, 0)),
                  pl.BlockSpec((1, 1, 1), lambda h: (h, 0, 0))],
        out_specs=pl.BlockSpec((1, B_PAD, od), lambda h: (h, 0, 0)),
        compiler_params=_cp(("parallel",)),
    )(x_pooled, w1, b1, w2, b2, w3, b3, flags)


# ----------------------------------------------------------------------------- kernel maps (host glue, vectorized numpy)
def build_dw_gather(coords, ts, ksize, n_pad, k_pad):
    """[k_pad, n_pad] neighbour row indices; missing neighbour / pad offset -> n_pad (zero row)."""
    n = coords.shape[0]
    r = ksize // 2
    c = coords.astype(np.int64).copy()
    lo = c[:, 1:].min()
    c[:, 1:] -= lo - r * ts
    span = int(c[:, 1:].max()) + r * ts + 1
    keys = ((c[:, 0] * span + c[:, 1]) * span + c[:, 2]) * span + c[:, 3]
    order = np.argsort(keys, kind="stable")
    skeys = keys[order]
    offs = np.array(list(itertools.product(range(-r, r + 1), repeat=3)), np.int64) * ts
    idx = np.full((k_pad, n_pad), n_pad, np.int32)
    for k in range(offs.shape[0]):
        nb = c[:, 1:] + offs[k]
        nkeys = ((c[:, 0] * span + nb[:, 0]) * span + nb[:, 1]) * span + nb[:, 2]
        pos = np.searchsorted(skeys, nkeys)
        posc = np.minimum(pos, n - 1)
        hit = skeys[posc] == nkeys
        idx[k, :n] = np.where(hit, order[posc], n_pad).astype(np.int32)
    return idx


def build_downsample(coords, ts, n_pad_in, tn):
    c = coords.astype(np.int64)
    new_ts = ts * 2
    q = np.concatenate([c[:, :1], (c[:, 1:] // new_ts) * new_ts], axis=1)
    all_sp = np.concatenate([c[:, 1:], q[:, 1:]], axis=0)
    lo = int(all_sp.min())
    span = int(all_sp.max()) - lo + 2 * ts + 2

    def enc(a):
        s = a[:, 1:] - lo
        return ((a[:, 0] * span + s[:, 0]) * span + s[:, 1]) * span + s[:, 2]

    _, first = np.unique(enc(q), return_index=True)
    out_coords = q[np.sort(first)]
    m = out_coords.shape[0]
    m_pad = _round_up(m, tn)

    ikeys = enc(c)
    order = np.argsort(ikeys, kind="stable")
    skeys = ikeys[order]
    offs = np.array(list(itertools.product((0, 1), repeat=3)), np.int64) * ts
    idx = np.full((DSVOL, m_pad), n_pad_in, np.int32)
    for k in range(DSVOL):
        nb = out_coords.copy()
        nb[:, 1:] += offs[k]
        nkeys = enc(nb)
        pos = np.searchsorted(skeys, nkeys)
        posc = np.minimum(pos, c.shape[0] - 1)
        hit = skeys[posc] == nkeys
        idx[k, :m] = np.where(hit, order[posc], n_pad_in).astype(np.int32)
    return out_coords, idx, new_ts


def _batch_mask(coords, n_pad):
    bidx = np.full((n_pad,), -1, np.int64)
    bidx[:coords.shape[0]] = coords[:, 0]
    return (bidx[None, :] == np.arange(B_PAD)[:, None]).astype(np.float32)   # [B_PAD, n_pad]


# ----------------------------------------------------------------------------- parameters
def init_params(key, in_channels):
    keys = iter(jax.random.split(key, 128))

    def tn(shape, std=0.02):
        return jax.random.truncated_normal(next(keys), -2.0, 2.0, shape, jnp.float32) * std

    def pad2(a, r, c):
        out = jnp.zeros((r, c), jnp.float32)
        return out.at[:a.shape[0], :a.shape[1]].set(a)

    p = {}
    p["stem_w"] = pad2(tn((in_channels, DIMS[0])), CIN_PAD, PDIMS[0]).astype(jnp.bfloat16)
    p["glob_w"] = pad2(tn((GLOB_DIM, DIMS[0])), GLOB_PAD, PDIMS[0]).astype(jnp.bfloat16)
    p["glob_b"] = jnp.zeros((1, PDIMS[0]), jnp.float32)

    p["blocks"] = []
    for i, (d, dp_, h) in enumerate(zip(DIMS, PDIMS, HDIMS)):
        stage = []
        for _ in range(DEPTHS[i]):
            stage.append(dict(
                dw_w=pad2(tn((KVOL, d)), K_PAD, dp_).astype(jnp.bfloat16),
                dw_b=jnp.zeros((1, dp_), jnp.float32),
                ln_g=pad2(jnp.ones((1, d), jnp.float32), 1, dp_),
                ln_b=jnp.zeros((1, dp_), jnp.float32),
                pw1_w=pad2(tn((d, h)), dp_, h).astype(jnp.bfloat16),
                pw1_b=jnp.zeros((1, h), jnp.float32),
                grn_g=jnp.zeros((1, h), jnp.float32),
                grn_b=jnp.zeros((1, h), jnp.float32),
                pw2_w=pad2(tn((h, d)), h, dp_).astype(jnp.bfloat16),
                pw2_b=jnp.zeros((1, dp_), jnp.float32),
            ))
        p["blocks"].append(stage)

    p["down"] = []
    for i in range(len(DIMS) - 1):
        w = tn((DSVOL, DIMS[i], DIMS[i + 1]))
        wp = jnp.zeros((DSVOL, PDIMS[i], PDIMS[i + 1]), jnp.float32)
        wp = wp.at[:, :DIMS[i], :DIMS[i + 1]].set(w)
        p["down"].append(dict(
            ln_g=pad2(jnp.ones((1, DIMS[i]), jnp.float32), 1, PDIMS[i]),
            ln_b=jnp.zeros((1, PDIMS[i]), jnp.float32),
            w=wp.astype(jnp.bfloat16),
            b=jnp.zeros((1, PDIMS[i + 1]), jnp.float32),
        ))

    d, d2, d3 = DIMS[-1], DIMS[-1] // 2, DIMS[-1] // 4
    out_dims = [1, 1, 1, 3, 1, 3]                    # e_vis, pt_miss, lep_mag, lep_dir, jet_mag, jet_dir
    flags = [1.0, 1.0, 1.0, 0.0, 1.0, 0.0]           # softplus on / off per head
    p["head_w1"] = jnp.stack([tn((d, d2)) for _ in range(6)]).astype(jnp.bfloat16)
    p["head_b1"] = jnp.zeros((6, 1, d2), jnp.float32)
    p["head_w2"] = jnp.stack([tn((d2, d3)) for _ in range(6)]).astype(jnp.bfloat16)
    p["head_b2"] = jnp.zeros((6, 1, d3), jnp.float32)
    p["head_w3"] = jnp.stack([pad2(tn((d3, od)), d3, OUT_PAD) for od in out_dims]).astype(jnp.bfloat16)
    p["head_b3"] = jnp.zeros((6, 1, OUT_PAD), jnp.float32)
    p["head_flag"] = jnp.asarray(flags, jnp.float32).reshape(6, 1, 1)
    return p


# ----------------------------------------------------------------------------- model pieces
def apply_block(bp, x, nbr_idx, mask, maskT, c_real):
    c_pad = x.shape[1]
    x_ext = jnp.concatenate([x, jnp.zeros((1, c_pad), x.dtype)], axis=0)
    gathered = jnp.take(x_ext, nbr_idx, axis=0)                 # [K_PAD, n_pad, c_pad] glue gather
    h = block_a_call(gathered, bp["dw_w"], bp["dw_b"], bp["ln_g"], bp["ln_b"],
                     bp["pw1_w"], bp["pw1_b"], c_real=c_real)
    # GRN statistics computed PER SAMPLE (addresses cross-batch-leak concern from review)
    ssq = grn_stats_call(h, mask)                               # [B_PAD, H] f32
    gx = jnp.sqrt(ssq)
    nx = gx / (jnp.mean(gx, axis=-1, keepdims=True) + 1e-6)
    return block_b_call(h, maskT, nx, bp["grn_g"], bp["grn_b"],
                        bp["pw2_w"], bp["pw2_b"], x)            # includes residual (drop_path=0)


def apply_downsample(dp, x, ds_idx, c_real):
    c_in = x.shape[1]
    x_ln = ln_call(x, dp["ln_g"], dp["ln_b"], c_real=c_real)
    x_ext = jnp.concatenate([x_ln, jnp.zeros((1, c_in), x_ln.dtype)], axis=0)
    g = jnp.take(x_ext, ds_idx, axis=0)                         # [8, m_pad, c_in] glue gather
    return down_call(g, dp["w"], dp["b"])


def forward(params, coords_np, feats_np, x_glob_np):
    coords = np.asarray(coords_np, np.int64)
    n = coords.shape[0]
    bsz = int(coords[:, 0].max()) + 1
    assert bsz <= B_PAD
    n_pad = _round_up(n, TN)

    f = np.zeros((n_pad, CIN_PAD), np.float32)
    f[:n, :feats_np.shape[1]] = np.asarray(feats_np)
    feats = jnp.asarray(f, jnp.bfloat16)
    xg = np.zeros((B_PAD, GLOB_PAD), np.float32)
    xg[:bsz, :x_glob_np.shape[1]] = np.asarray(x_glob_np)
    xg = jnp.asarray(xg, jnp.bfloat16)

    mask_np = _batch_mask(coords, n_pad)
    mask = jnp.asarray(mask_np)
    maskT = jnp.asarray(np.ascontiguousarray(mask_np.T))

    # stem (k=1 conv, no bias) fused with global-MLP broadcast-add
    x = stem_call(feats, params["stem_w"], maskT, xg, params["glob_w"], params["glob_b"])

    ts = 1
    for i in range(len(DIMS)):
        nbr = jnp.asarray(build_dw_gather(coords, ts, KSIZE, n_pad, K_PAD))
        for j in range(DEPTHS[i]):
            x = apply_block(params["blocks"][i][j], x, nbr, mask, maskT, c_real=DIMS[i])
        if i < len(DIMS) - 1:
            out_coords, ds_idx, ts = build_downsample(coords, ts, n_pad, TN)
            x = apply_downsample(params["down"][i], x, jnp.asarray(ds_idx), c_real=DIMS[i])
            coords = out_coords
            n_pad = ds_idx.shape[1]
            mask_np = _batch_mask(coords, n_pad)
            mask = jnp.asarray(mask_np)
            maskT = jnp.asarray(np.ascontiguousarray(mask_np.T))

    pooled = pool_call(x, maskT)                                # [B_PAD, 768] f32, single pass
    counts = jnp.asarray(mask_np.sum(axis=1))
    pooled = jnp.where(counts[:, None] > 0, pooled, 0.0)        # guard empty batches (no -3e38 sentinel)
    pooled = pooled.astype(jnp.bfloat16)

    hout = heads_call(pooled, params["head_w1"], params["head_b1"],
                      params["head_w2"], params["head_b2"],
                      params["head_w3"], params["head_b3"], params["head_flag"])
    names = ["out_e_vis", "out_pt_miss", "out_lepton_momentum_mag",
             "out_lepton_momentum_dir", "out_jet_momentum_mag", "out_jet_momentum_dir"]
    widths = [1, 1, 1, 3, 1, 3]
    return {nm: hout[hi, :bsz, :w] for hi, (nm, w) in enumerate(zip(names, widths))}


# ----------------------------------------------------------------------------- main
if __name__ == "__main__":
    key = jax.random.PRNGKey(0)
    k_coords, k_feats, k_glob, k_params = jax.random.split(key, 4)

    batch, pts_per_batch, grid_sz, in_channels = 2, 24, 16, 4

    coords_list = []
    for b in range(batch):
        flat = np.asarray(jax.random.permutation(jax.random.fold_in(k_coords, b), grid_sz ** 3))[:pts_per_batch]
        xs, ys, zs = flat // (grid_sz * grid_sz), (flat // grid_sz) % grid_sz, flat % grid_sz
        coords_list.append(np.stack([np.full(pts_per_batch, b), xs, ys, zs], axis=1))
    coords = np.concatenate(coords_list, axis=0).astype(np.int64)          # [48, 4]

    feats = np.asarray(jax.random.normal(k_feats, (coords.shape[0], in_channels), jnp.float32))   # [48, 4]
    x_glob = np.asarray(jax.random.normal(k_glob, (batch, GLOB_DIM), jnp.float32))                # [2, 28]

    params = init_params(k_params, in_channels)

    out = forward(params, coords, feats, x_glob)
    jax.block_until_ready(out)
    print("KERNEL_OK")
</pallas_src>

<mosaic_0001>
module attributes {stable_mosaic.version = 11 : i64} {
  func.func @_stem_kernel(%arg0: i32, %arg1: memref<128x128xbf16, #tpu.memory_space<vmem>>, %arg2: memref<128x128xbf16, #tpu.memory_space<vmem>>, %arg3: memref<128x8xf32, #tpu.memory_space<vmem>>, %arg4: memref<8x128xbf16, #tpu.memory_space<vmem>>, %arg5: memref<128x128xbf16, #tpu.memory_space<vmem>>, %arg6: memref<1x128xf32, #tpu.memory_space<vmem>>, %arg7: memref<128x128xbf16, #tpu.memory_space<vmem>>) attributes {dimension_semantics = [#tpu.dimension_semantics<parallel>], iteration_bounds = array<i64: 1>, scalar_prefetch = 0 : i64, scratch_operands = 0 : i64, tpu.core_type = #tpu.core_type<tc>, window_params = [{transform_indices = @transform_0, window_bounds = array<i64: 128, 128>}, {pipeline_mode = #tpu.pipeline_mode<synchronous>, transform_indices = @transform_1, window_bounds = array<i64: 128, 128>}, {transform_indices = @transform_2, window_bounds = array<i64: 128, 8>}, {pipeline_mode = #tpu.pipeline_mode<synchronous>, transform_indices = @transform_3, window_bounds = array<i64: 8, 128>}, {pipeline_mode = #tpu.pipeline_mode<synchronous>, transform_indices = @transform_4, window_bounds = array<i64: 128, 128>}, {pipeline_mode = #tpu.pipeline_mode<synchronous>, transform_indices = @transform_5, window_bounds = array<i64: 1, 128>}, {transform_indices = @transform_6, window_bounds = array<i64: 128, 128>}]} {
    %c0 = arith.constant 0 : index
    %c0_0 = arith.constant 0 : index
    %0 = vector.load %arg1[%c0, %c0_0] : memref<128x128xbf16, #tpu.memory_space<vmem>>, vector<128x128xbf16>
    %c0_1 = arith.constant 0 : index
    %c0_2 = arith.constant 0 : index
    %1 = vector.load %arg2[%c0_1, %c0_2] : memref<128x128xbf16, #tpu.memory_space<vmem>>, vector<128x128xbf16>
    %cst = arith.constant dense<0.000000e+00> : vector<128x128xf32>
    %2 = tpu.matmul %0, %1, %cst {dimension_numbers = #tpu.dot_dimension_numbers<[1], [0], [0], [1], [0, 0, 1, 1], [], []>} : vector<128x128xbf16>, vector<128x128xbf16>, vector<128x128xf32> -> vector<128x128xf32>
    %c0_3 = arith.constant 0 : index
    %c0_4 = arith.constant 0 : index
    %3 = vector.load %arg4[%c0_3, %c0_4] : memref<8x128xbf16, #tpu.memory_space<vmem>>, vector<8x128xbf16>
    %c0_5 = arith.constant 0 : index
    %c0_6 = arith.constant 0 : index
    %4 = vector.load %arg5[%c0_5, %c0_6] : memref<128x128xbf16, #tpu.memory_space<vmem>>, vector<128x128xbf16>
    %cst_7 = arith.constant dense<0.000000e+00> : vector<8x128xf32>
    %5 = tpu.matmul %3, %4, %cst_7 {dimension_numbers = #tpu.dot_dimension_numbers<[1], [0], [0], [1], [0, 0, 1, 1], [], []>} : vector<8x128xbf16>, vector<128x128xbf16>, vector<8x128xf32> -> vector<8x128xf32>
    %c0_8 = arith.constant 0 : index
    %c0_9 = arith.constant 0 : index
    %6 = vector.load %arg6[%c0_8, %c0_9] : memref<1x128xf32, #tpu.memory_space<vmem>>, vector<1x128xf32>
    %7 = vector.broadcast %6 : vector<1x128xf32> to vector<8x128xf32>
    %8 = arith.addf %5, %7 : vector<8x128xf32>
    %c0_10 = arith.constant 0 : index
    %c0_11 = arith.constant 0 : index
    %9 = vector.load %arg3[%c0_10, %c0_11] : memref<128x8xf32, #tpu.memory_space<vmem>>, vector<128x8xf32>
    %cst_12 = arith.constant dense<0.000000e+00> : vector<128x128xf32>
    %10 = tpu.matmul %9, %8, %cst_12 {dimension_numbers = #tpu.dot_dimension_numbers<[1], [0], [0], [1], [0, 0, 1, 1], [], []>} : vector<128x8xf32>, vector<8x128xf32>, vector<128x128xf32> -> vector<128x128xf32>
    %11 = arith.addf %2, %10 : vector<128x128xf32>
    %12 = arith.truncf %11 : vector<128x128xf32> to vector<128x128xbf16>
    %c0_13 = arith.constant 0 : index
    %c0_14 = arith.constant 0 : index
    %13 = vector.load %arg7[%c0_13, %c0_14] : memref<128x128xbf16, #tpu.memory_space<vmem>>, vector<128x128xbf16>
    tpu.vector_store %arg7[%c0_13, %c0_14], %12 {strides = array<i32>} : memref<128x128xbf16, #tpu.memory_space<vmem>>, vector<128x128xbf16>,
    return
  }
  func.func @transform_0(%arg0: i32) -> (i32, i32) {
    %c0_i32 = arith.constant 0 : i32
    %c0_i32_0 = arith.constant 0 : i32
    return %arg0, %c0_i32 : i32, i32
  }
  func.func @transform_1(%arg0: i32) -> (i32, i32) {
    %c0_i32 = arith.constant 0 : i32
    %c0_i32_0 = arith.constant 0 : i32
    %c0_i32_1 = arith.constant 0 : i32
    return %c0_i32, %c0_i32_0 : i32, i32
  }
  func.func @transform_2(%arg0: i32) -> (i32, i32) {
    %c0_i32 = arith.constant 0 : i32
    %c0_i32_0 = arith.constant 0 : i32
    return %arg0, %c0_i32 : i32, i32
  }
  func.func @transform_3(%arg0: i32) -> (i32, i32) {
    %c0_i32 = arith.constant 0 : i32
    %c0_i32_0 = arith.constant 0 : i32
    %c0_i32_1 = arith.constant 0 : i32
    return %c0_i32, %c0_i32_0 : i32, i32
  }
  func.func @transform_4(%arg0: i32) -> (i32, i32) {
    %c0_i32 = arith.constant 0 : i32
    %c0_i32_0 = arith.constant 0 : i32
    %c0_i32_1 = arith.constant 0 : i32
    return %c0_i32, %c0_i32_0 : i32, i32
  }
  func.func @transform_5(%arg0: i32) -> (i32, i32) {
    %c0_i32 = arith.constant 0 : i32
    %c0_i32_0 = arith.constant 0 : i32
    %c0_i32_1 = arith.constant 0 : i32
    return %c0_i32, %c0_i32_0 : i32, i32
  }
  func.func @transform_6(%arg0: i32) -> (i32, i32) {
    %c0_i32 = arith.constant 0 : i32
    %c0_i32_0 = arith.constant 0 : i32
    return %arg0, %c0_i32 : i32, i32
  }
}

</mosaic_0001>

<bundles_post_ra>
// kernel: stem_call.1
= control target key start
LH: loop header
LB: loop body
LE: loop exit
PB: predicated region body
PF: predicated region fallthrough
CT: control target
= control target key end

     0   :  { %11 = vsyncpa [#allocation3], 0  ;;  %s898_s0 = inlined_call_operand.vmem [shape: bf16[128,128], index: 0, kind: input, shape index: {}]   ;;  %s899_s1 = inlined_call_operand.vmem [shape: bf16[128,128], index: 1, kind: input, shape index: {}]   ;;  %s900_s2 = inlined_call_operand.vmem [shape: f32[128,8], index: 2, kind: input, shape index: {}]   ;;  %s901_s3 = inlined_call_operand.vmem [shape: bf16[8,128], index: 3, kind: input, shape index: {}]   ;;  %s902_s4 = inlined_call_operand.hbm [shape: bf16[128,128], index: 4, kind: input, shape index: {}]   ;;  %s903_s5 = inlined_call_operand.vmem [shape: f32[1,128], index: 5, kind: input, shape index: {}]   ;;  %s904_s6 = inlined_call_operand.hbm [shape: bf16[128,128], index: 6, kind: output, shape index: {}]  }
   0x1   :  { %12 = vsyncpa [#allocation4], 0  ;;  %s25_s23 = sshll.u32 %s902_s4, 4  ;;  %s729_s24 = smov [#allocation2]   ;;  %s26_s23 = int_to_ptr.hbm [resolvable:$true] %s25_s23 }
   0x2   :  { %s27_s25 = sshll.u32 %s729_s24, 4  ;;  %s730_s26 = smov 64   ;;  %s28_s25 = int_to_ptr.vmem [resolvable:$true] %s27_s25 }
   0x3   :  { %s731_s27 = smov 4  }
   0x4   :  { %33 = dma.hbm_to_vmem [thread:$0]  %s26_s23, 1024, %s28_s25, [#allocation3], %s730_s26, %s730_s26, %s731_s27  }
   0x5   :  { %725 = dma.done.wait [#allocation3], 1024  }
   0x6   :  { %726 = vsyncadd [#allocation3], 4294966272  ;;  %v615_v0 = vld [vmem:[#allocation2 + $0x38] sm:$0xff]  ;;  %v614_v1 = vld [vmem:[#allocation2 + $0x30] sm:$0xff]  ;;  %vm170_vm0 = vcmask 64512   ;;  %s467_s21 = sshll.u32 %s904_s6, 4  ;;  %s468_s21 = int_to_ptr.hbm [resolvable:$true] %s467_s21 }
   0x7   :  { %141 = vmatpush.bf16.msra.mxu0 %v615_v0  ;;  %v607_v2 = vld [vmem:[%s899_s1 + $0x38] sm:$0xff]  ;;  %v606_v3 = vld [vmem:[%s899_s1 + $0x30] sm:$0xff]  ;;  %v613_v4 = vld [vmem:[#allocation2 + $0x28] sm:$0xff] }
   0x8   :  { %380 = vmatpush.bf16.msra.mxu2 %v607_v2  ;;  %664 = vmatpush.bf16.msra.mxu3 %v607_v2  ;;  %v605_v5 = vld [vmem:[%s899_s1 + $0x28] sm:$0xff]  ;;  %v612_v6 = vld [vmem:[#allocation2 + $0x20] sm:$0xff]  ;;  %v611_v8 = vld [vmem:[#allocation2 + $0x18] sm:$0xff] }
   0x9   :  { %v604_v7 = vld [vmem:[%s899_s1 + $0x20] sm:$0xff]  ;;  %v603_v9 = vld [vmem:[%s899_s1 + $0x18] sm:$0xff]  ;;  %v610_v10 = vld [vmem:[#allocation2 + $0x10] sm:$0xff] }
   0xa   :  { %v602_v11 = vld [vmem:[%s899_s1 + $0x10] sm:$0xff]  ;;  %v609_v12 = vld [vmem:[#allocation2 + $0x8] sm:$0xff]  ;;  %v608_v14 = vld [vmem:[#allocation2] sm:$0xff] }
   0xb   :  { %142 = vmatpush.bf16.msra.mxu0 %v614_v1  ;;  %v601_v13 = vld [vmem:[%s899_s1 + $0x8] sm:$0xff]  ;;  %v600_v15 = vld [vmem:[%s899_s1] sm:$0xff]  ;;  %v594_v19 = vld [vmem:[%s898_s0 + $0x10] sm:$0xff] }
   0xc   :  { %381 = vmatpush.bf16.msra.mxu2 %v606_v3  ;;  %665 = vmatpush.bf16.msra.mxu3 %v606_v3  ;;  %v72_v16 = vld [vmem:[%s901_s3] sm:$0xf]  ;;  %v593_v18 = vld [vmem:[%s898_s0 + $0x8] sm:$0xff]  ;;  %v595_v20 = vld [vmem:[%s898_s0 + $0x18] sm:$0xff] }
   0xd   :  { %v592_v17 = vld [vmem:[%s898_s0] sm:$0xff]  ;;  %v597_v27 = vld [vmem:[%s898_s0 + $0x28] sm:$0xff]  ;;  %v160_v31 = vld [vmem:[%s900_s2 + $0x30] sm:$0xff] }
   0xe   :  { %v596_v21 = vld [vmem:[%s898_s0 + $0x20] sm:$0xff]  ;;  %v159_v29 = vld [vmem:[%s900_s2 + $0x28] sm:$0xff]  ;;  %v156_v32 = vld [vmem:[%s900_s2 + $0x10] sm:$0xff] }
   0xf   :  { %143 = vmatpush.bf16.msra.mxu0 %v613_v4  ;;  %v676_v22 = vld [vmem:[%s903_s5] ss:$0 sm:$0xff]  ;;  %v155_v30 = vld [vmem:[%s900_s2 + $0x8] sm:$0xff]  ;;  %v598_v33 = vld [vmem:[%s898_s0 + $0x30] sm:$0xff] }
  0x10   :  { %382 = vmatpush.bf16.msra.mxu2 %v605_v5  ;;  %666 = vmatpush.bf16.msra.mxu3 %v605_v5  ;;  %v158_v25 = vld [vmem:[%s900_s2 + $0x20] sm:$0xff]  ;;  %v161_v34 = vld [vmem:[%s900_s2 + $0x38] sm:$0xff]  ;;  %v163_v38 = vld [vmem:[%s900_s2 + $0x48] sm:$0xff] }
  0x11   :  { %v154_v26 = vld [vmem:[%s900_s2] sm:$0xff]  ;;  %v157_v35 = vld [vmem:[%s900_s2 + $0x18] sm:$0xff]  ;;  %v164_v39 = vld [vmem:[%s900_s2 + $0x50] sm:$0xff] }
  0x12   :  { %v162_v36 = vld [vmem:[%s900_s2 + $0x40] sm:$0xff]  ;;  %v599_v37 = vld [vmem:[%s898_s0 + $0x38] sm:$0xff]  ;;  %v167_v42 = vld [vmem:[%s900_s2 + $0x68] sm:$0xff] }
  0x13   :  { %144 = vmatpush.bf16.msra.mxu0 %v612_v6  ;;  %v165_v40 = vld [vmem:[%s900_s2 + $0x58] sm:$0xff]  ;;  %v166_v41 = vld [vmem:[%s900_s2 + $0x60] sm:$0xff]  ;;  %v168_v43 = vld [vmem:[%s900_s2 + $0x70] sm:$0xff] }
  0x14   :  { %383 = vmatpush.bf16.msra.mxu2 %v604_v7  ;;  %667 = vmatpush.bf16.msra.mxu3 %v604_v7  ;;  %v169_v45 = vld [vmem:[%s900_s2 + $0x78] sm:$0xff]  ;;  %s732_s2 = smov [#allocation5]  }
  0x15   :  { %s465_s18 = sshll.u32 %s732_s2, 4  ;;  %s466_s18 = int_to_ptr.vmem [resolvable:$true] %s465_s18 }
  0x17   :  { %145 = vmatpush.bf16.msra.mxu0 %v611_v8 }
  0x18   :  { %384 = vmatpush.bf16.msra.mxu2 %v603_v9  ;;  %668 = vmatpush.bf16.msra.mxu3 %v603_v9 }
  0x1b   :  { %146 = vmatpush.bf16.msra.mxu0 %v610_v10 }
  0x1c   :  { %385 = vmatpush.bf16.msra.mxu2 %v602_v11  ;;  %669 = vmatpush.bf16.msra.mxu3 %v602_v11 }
  0x1f   :  { %147 = vmatpush.bf16.msra.mxu0 %v609_v12 }
  0x20   :  { %386 = vmatpush.bf16.msra.mxu2 %v601_v13  ;;  %670 = vmatpush.bf16.msra.mxu3 %v601_v13 }
  0x23   :  { %148 = vmatpush.bf16.msra.mxu0 %v608_v14 }
  0x24   :  { %387 = vmatpush.bf16.msra.mxu2 %v600_v15  ;;  %671 = vmatpush.bf16.msra.mxu3 %v600_v15 }
  0x26   :  { %149 = vmatmul.bf16.vlgmr.msra.gmra.mxu0 %v72_v16 }
  0x27   :  { %388 = vmatmul.bf16.vlgmr.msra.gmra.mxu2 %v592_v17  ;;  %408 = vmatmul.bf16.vlgmr.msra.gmra.mxu3 %v596_v21 }
  0x37   :  { %393 = vmatmul.bf16.gmra.mxu2 %v593_v18  ;;  %413 = vmatmul.bf16.gmra.mxu3 %v597_v27 }
  0x47   :  { %398 = vmatmul.bf16.gmra.mxu2 %v594_v19  ;;  %418 = vmatmul.bf16.gmra.mxu3 %v598_v33 }
  0x57   :  { %403 = vmatmul.bf16.gmra.mxu2 %v595_v20  ;;  %423 = vmatmul.bf16.gmra.mxu3 %v599_v37 }
  0xa3   :  { %v150_v23 = vpop.f32.mrf.mxu0 }
  0xa4   :  { %v151_v24 = vadd.f32 %v676_v22, %v150_v23 }
  0xa6   :  { %234 = vmatpush.msrb.mxu0 %v151_v24  ;;  %663 = vmatpush.msra.mxu1 %v151_v24 }
  0xa7   :  { %516 = vmatmul.msk.f32.vlgmr.msra.gmra.mxu1 %vm170_vm0, %v158_v25  ;;  %512 = vmatmul.msk.f32.vlgmr.msrb.gmra.mxu0 %vm170_vm0, %v154_v26 }
  0xaa   :  { %v389_v44 = vpop.f32.mrf.mxu2  ;;  %v409_v0 = vpop.f32.mrf.mxu3 }
  0xab   :  { %v152_v28 = vpop.f32.mrf.mxu0 }
  0xaf   :  { %517 = vmatmul.msk.f32.gmra.mxu1 %vm170_vm0, %v159_v29  ;;  %513 = vmatmul.msk.f32.gmra.mxu0 %vm170_vm0, %v155_v30 }
  0xb2   :  { %v391_v46 = vpop.f32.mrf.mxu2  ;;  %v411_v10 = vpop.f32.mrf.mxu3 }
  0xb7   :  { %518 = vmatmul.msk.f32.gmra.mxu1 %vm170_vm0, %v160_v31  ;;  %514 = vmatmul.msk.f32.gmra.mxu0 %vm170_vm0, %v156_v32 }
  0xba   :  { %v394_v47 = vpop.f32.mrf.mxu2  ;;  %v414_v12 = vpop.f32.mrf.mxu3 }
  0xbf   :  { %519 = vmatmul.msk.f32.gmra.mxu1 %vm170_vm0, %v161_v34  ;;  %515 = vmatmul.msk.f32.gmra.mxu0 %vm170_vm0, %v157_v35 }
  0xc2   :  { %v396_v48 = vpop.f32.mrf.mxu2  ;;  %v416_v18 = vpop.f32.mrf.mxu3 }
  0xc7   :  { %520 = vmatmul.msk.f32.gmra.mxu1 %vm170_vm0, %v162_v36 }
  0xca   :  { %v399_v49 = vpop.f32.mrf.mxu2  ;;  %v419_v22 = vpop.f32.mrf.mxu3 }
  0xcf   :  { %521 = vmatmul.msk.f32.gmra.mxu1 %vm170_vm0, %v163_v38 }
  0xd2   :  { %v401_v52 = vpop.f32.mrf.mxu2  ;;  %v421_v25 = vpop.f32.mrf.mxu3 }
  0xd7   :  { %522 = vmatmul.msk.f32.gmra.mxu1 %vm170_vm0, %v164_v39 }
  0xda   :  { %v404_v61 = vpop.f32.mrf.mxu2  ;;  %v424_v30 = vpop.f32.mrf.mxu3 }
  0xdf   :  { %523 = vmatmul.msk.f32.gmra.mxu1 %vm170_vm0, %v165_v40 }
  0xe2   :  { %v406_v1 = vpop.f32.mrf.mxu2  ;;  %v426_v32 = vpop.f32.mrf.mxu3 }
  0xe7   :  { %524 = vmatmul.msk.f32.gmra.mxu1 %vm170_vm0, %v166_v41 }
  0xef   :  { %525 = vmatmul.msk.f32.gmra.mxu1 %vm170_vm0, %v167_v42 }
  0xf7   :  { %526 = vmatmul.msk.f32.gmra.mxu1 %vm170_vm0, %v168_v43 }
  0xff   :  { %527 = vmatmul.msk.f32.gmra.mxu1 %vm170_vm0, %v169_v45 }
 0x124   :  { %v248_v50 = vpop.f32.mrf.mxu1  ;;  %v236_v51 = vpop.f32.mrf.mxu0 }
 0x125   :  { %v390_v53 = vadd.f32 %v389_v44, %v236_v51  ;;  %v400_v56 = vadd.f32 %v399_v49, %v248_v50 }
 0x12c   :  { %v251_v54 = vpop.f32.mrf.mxu1  ;;  %v239_v55 = vpop.f32.mrf.mxu0 }
 0x12d   :  { %v402_v57 = vadd.f32 %v401_v52, %v251_v54  ;;  %v392_v58 = vadd.f32 %v391_v46, %v239_v55 }
 0x12f   :  { %v629_v59 = vpack.c.bf16 %v402_v57, %v400_v56  ;;  %v619_v60 = vpack.c.bf16 %v392_v58, %v390_v53 }
 0x131   :  { %657 = vst [vmem:[#allocation5 + $0x10] sm:$0xff] %v629_v59  }
 0x132   :  { %620 = vst [vmem:[#allocation5] sm:$0xff] %v619_v60  }
 0x134   :  { %v254_v62 = vpop.f32.mrf.mxu1  ;;  %v242_v63 = vpop.f32.mrf.mxu0 }
 0x135   :  { %v395_v2 = vadd.f32 %v394_v47, %v242_v63  ;;  %v405_v5 = vadd.f32 %v404_v61, %v254_v62 }
 0x13c   :  { %v257_v3 = vpop.f32.mrf.mxu1  ;;  %v245_v4 = vpop.f32.mrf.mxu0 }
 0x13d   :  { %v407_v6 = vadd.f32 %v406_v1, %v257_v3  ;;  %v397_v7 = vadd.f32 %v396_v48, %v245_v4 }
 0x13f   :  { %v634_v8 = vpack.c.bf16 %v407_v6, %v405_v5  ;;  %v624_v9 = vpack.c.bf16 %v397_v7, %v395_v2 }
 0x141   :  { %658 = vst [vmem:[#allocation5 + $0x18] sm:$0xff] %v634_v8  }
 0x142   :  { %656 = vst [vmem:[#allocation5 + $0x8] sm:$0xff] %v624_v9  }
 0x144   :  { %v260_v11 = vpop.f32.mrf.mxu1 }
 0x145   :  { %v410_v14 = vadd.f32 %v409_v0, %v260_v11 }
 0x14c   :  { %v263_v13 = vpop.f32.mrf.mxu1 }
 0x14d   :  { %v412_v15 = vadd.f32 %v411_v10, %v263_v13 }
 0x14f   :  { %v639_v16 = vpack.c.bf16 %v412_v15, %v410_v14 }
 0x151   :  { %659 = vst [vmem:[#allocation5 + $0x20] sm:$0xff] %v639_v16  }
 0x154   :  { %v266_v17 = vpop.f32.mrf.mxu1 }
 0x155   :  { %v415_v20 = vadd.f32 %v414_v12, %v266_v17 }
 0x15c   :  { %v269_v19 = vpop.f32.mrf.mxu1 }
 0x15d   :  { %v417_v21 = vadd.f32 %v416_v18, %v269_v19 }
 0x15f   :  { %v644_v23 = vpack.c.bf16 %v417_v21, %v415_v20 }
 0x161   :  { %660 = vst [vmem:[#allocation5 + $0x28] sm:$0xff] %v644_v23  }
 0x164   :  { %v272_v24 = vpop.f32.mrf.mxu1 }
 0x165   :  { %v420_v27 = vadd.f32 %v419_v22, %v272_v24 }
 0x16c   :  { %v275_v26 = vpop.f32.mrf.mxu1 }
 0x16d   :  { %v422_v28 = vadd.f32 %v421_v25, %v275_v26 }
 0x16f   :  { %v649_v29 = vpack.c.bf16 %v422_v28, %v420_v27 }
 0x171   :  { %661 = vst [vmem:[#allocation5 + $0x30] sm:$0xff] %v649_v29  }
 0x174   :  { %v278_v31 = vpop.f32.mrf.mxu1 }
 0x175   :  { %v425_v34 = vadd.f32 %v424_v30, %v278_v31 }
 0x17c   :  { %v281_v33 = vpop.f32.mrf.mxu1 }
 0x17d   :  { %v427_v35 = vadd.f32 %v426_v32, %v281_v33 }
 0x17f   :  { %v654_v36 = vpack.c.bf16 %v427_v35, %v425_v34 }
 0x181   :  { %662 = vst [vmem:[#allocation5 + $0x38] sm:$0xff] %v654_v36  }
 0x182   :  { %473 = dma.vmem_to_hbm [thread:$0]  %s466_s18, 1024, %s468_s21, [#allocation4], %s730_s26, %s730_s26, %s731_s27  }
 0x183   :  { %727 = dma.done.wait [#allocation4], 1024  }
 0x184   :  { %728 = vsyncadd [#allocation4], 4294966272 }
 0x185   :  { %478 = vsyncpa [#allocation3], 1 }
 0x186   :  { %479 = vsyncpa [#allocation4], 1 }

</bundles_post_ra>
